<compile_context>
chip_gen: v7x
topology: tpu7x:2x2x1
jax: 0.10.0
libtpu: 0.0.40
codegen_flags: <defaults>
</compile_context>

<pallas_src>
import functools

import jax
import jax.numpy as jnp
from jax import lax
from jax.experimental import pallas as pl
from jax.experimental.pallas import tpu as pltpu


def _round_up(x, m):
    return (x + m - 1) // m * m


def _fused_mlsa_kernel(x_ref, wqkv_ref, g_ref, b_ref, o_ref, *,
                       compute_dtype, d_pad, weights_resident):
    """One grid step = one (bt, S, D) batch tile x one attention layer.

    Grid = (B // bt, L); layer axis is "arbitrary" and the output block index
    depends only on the batch axis, so o_ref is the resident activation
    carrier across all layers of a batch tile.

    x_ref    : (bt, S, D)        input tile (read only at layer 0)
    wqkv_ref : (L or 1, D, 3*Dp) packed [Wq^T/sqrt(D) | Wk^T | Wv^T] (128-lane
                                 aligned chunks), compute dtype
    g_ref    : (L or 1, 1, D)    LayerNorm gamma (f32)
    b_ref    : (L or 1, 1, D)    LayerNorm beta  (f32)
    o_ref    : (bt, S, D)        activation / output tile (f32)
    """
    layer = pl.program_id(1)

    @pl.when(layer == 0)
    def _seed_activation():
        o_ref[...] = x_ref[...]

    bt, S, D = o_ref.shape
    Dp = d_pad

    widx = layer if weights_resident else 0
    w = wqkv_ref[widx].astype(compute_dtype)      # (D, 3*Dp)
    g = g_ref[widx]                               # (1, D)
    b = b_ref[widx]                               # (1, D)

    h = o_ref[...].astype(jnp.float32)            # (bt, S, D)
    hc = h.astype(compute_dtype)                  # cast ONCE per layer

    # --- fused Q/K/V projection: one (bt*S, D) @ (D, 3*Dp) MXU matmul -------
    qkv = jnp.dot(hc.reshape(bt * S, D), w,
                  preferred_element_type=jnp.float32)       # (bt*S, 3*Dp)
    qkv = qkv.reshape(bt, S, 3 * Dp)
    # Each chunk starts on a 128-lane boundary (Dp multiple of 128).
    q = qkv[:, :, 0 * Dp:0 * Dp + D]              # 1/sqrt(D) folded into Wq
    k = qkv[:, :, 1 * Dp:1 * Dp + D]
    v = qkv[:, :, 2 * Dp:2 * Dp + D]

    # --- scaled dot-product attention (no explicit k.T, f32 accumulation) ---
    energy = jnp.einsum("bqd,bkd->bqk",
                        q.astype(compute_dtype), k.astype(compute_dtype),
                        preferred_element_type=jnp.float32)  # (bt, S, S)
    energy = energy - jnp.max(energy, axis=-1, keepdims=True)
    p = jnp.exp(energy)
    denom = jnp.sum(p, axis=-1, keepdims=True)               # (bt, S, 1)
    out = jnp.einsum("bqk,bkd->bqd",
                     p.astype(compute_dtype), v.astype(compute_dtype),
                     preferred_element_type=jnp.float32)      # (bt, S, D)
    # Normalize AFTER the PV matmul (S*D multiplies instead of S*S).
    out = out * pl.reciprocal(denom, approx=True)

    # --- residual + LayerNorm (eps=1e-5, biased variance, affine) -----------
    y = h + out
    mean = jnp.mean(y, axis=-1, keepdims=True)
    var = jnp.mean((y - mean) ** 2, axis=-1, keepdims=True)
    xhat = (y - mean) * lax.rsqrt(var + 1e-5)
    o_ref[...] = xhat * g + b


def _vmem_capacity_bytes():
    try:
        return int(pltpu.get_tpu_info().vmem_capacity_bytes)
    except Exception:
        return 64 * 1024 * 1024   # conservative (v7x per-TC VMEM)


def _plan(B, S, D, Dp, L, weight_bytes_per_elem):
    """Pick batch tile, weight residency and a vmem limit (generation-aware)."""
    cap = _vmem_capacity_bytes()
    budget = cap // 2                             # ~32 MiB v7x, ~64 MiB v5e/v6e

    # Resident weights: full (L, D, 3*Dp) block (count a 2x allocation margin).
    resident_weight_bytes = 2 * L * D * 3 * Dp * weight_bytes_per_elem
    weights_resident = resident_weight_bytes <= budget // 4
    fixed = (resident_weight_bytes if weights_resident
             else 2 * D * 3 * Dp * weight_bytes_per_elem)
    fixed += 2 * 2 * L * D * 4                    # gamma + beta (negligible)

    bt_cap = max(1, B // 2)                       # keep parallel axis >= 2 (v7x)
    best = 1
    for bt in range(1, bt_cap + 1):
        if B % bt:
            continue
        rows = bt * S
        per_step = 2 * 2 * rows * D * 4           # x + out blocks, double-buffered
        per_step += 4 * rows * (8 * D + 3 * Dp + 2 * S)   # f32 in-kernel temps
        if fixed + per_step > budget:
            break
        best = bt
        if rows >= 256:                           # fill the 256-wide MXU M dim
            break

    rows = best * S
    est = fixed + 2 * 2 * rows * D * 4 + 4 * rows * (8 * D + 3 * Dp + 2 * S)
    vmem_limit = int(min(cap * 3 // 4, max(2 * est, 32 * 1024 * 1024)))
    return best, weights_resident, vmem_limit


def multi_layer_self_attention(x, wqkv_t, gamma, beta, *,
                               compute_dtype=jnp.bfloat16):
    """MultiLayerSelfAttention.forward (mask=None); all layers in ONE kernel.

    x      : (B, S, D) float32
    wqkv_t : (L, D, 3*Dp) packed [Wq^T/sqrt(D) | Wk^T | Wv^T], Dp = ceil128(D)
    gamma  : (L, 1, D) f32,  beta : (L, 1, D) f32
    """
    B, S, D = x.shape
    L, _, Dp3 = wqkv_t.shape
    Dp = Dp3 // 3

    bt, weights_resident, vmem_limit = _plan(
        B, S, D, Dp, L, jnp.dtype(wqkv_t.dtype).itemsize)

    if weights_resident:
        w_spec = pl.BlockSpec((L, D, 3 * Dp), lambda i, l: (0, 0, 0))
        g_spec = pl.BlockSpec((L, 1, D), lambda i, l: (0, 0, 0))
        b_spec = pl.BlockSpec((L, 1, D), lambda i, l: (0, 0, 0))
    else:
        w_spec = pl.BlockSpec((1, D, 3 * Dp), lambda i, l: (l, 0, 0))
        g_spec = pl.BlockSpec((1, 1, D), lambda i, l: (l, 0, 0))
        b_spec = pl.BlockSpec((1, 1, D), lambda i, l: (l, 0, 0))

    kernel = functools.partial(_fused_mlsa_kernel,
                               compute_dtype=compute_dtype,
                               d_pad=Dp,
                               weights_resident=weights_resident)
    return pl.pallas_call(
        kernel,
        out_shape=jax.ShapeDtypeStruct((B, S, D), jnp.float32),
        grid=(B // bt, L),
        in_specs=[
            pl.BlockSpec((bt, S, D), lambda i, l: (i, 0, 0)),   # x (layer 0 only)
            w_spec,                                             # packed QKV weights
            g_spec,                                             # LayerNorm gamma
            b_spec,                                             # LayerNorm beta
        ],
        out_specs=pl.BlockSpec((bt, S, D), lambda i, l: (i, 0, 0)),
        compiler_params=pltpu.CompilerParams(
            dimension_semantics=("parallel", "arbitrary"),
            vmem_limit_bytes=vmem_limit),
    )(x, wqkv_t, gamma, beta)


def init_params(key, split_dim, num_layers):
    """Per-layer parameters with PyTorch shapes / init.

    nn.Linear(D, D, bias=False): weight (D, D) ~ U(-1/sqrt(D), 1/sqrt(D))
    nn.LayerNorm(D): gamma = ones(D), beta = zeros(D)
    """
    params = []
    bound = 1.0 / (split_dim ** 0.5)
    for _ in range(num_layers):
        kq, kk, kv, key = jax.random.split(key, 4)
        wq = jax.random.uniform(kq, (split_dim, split_dim), jnp.float32, -bound, bound)
        wk = jax.random.uniform(kk, (split_dim, split_dim), jnp.float32, -bound, bound)
        wv = jax.random.uniform(kv, (split_dim, split_dim), jnp.float32, -bound, bound)
        gamma = jnp.ones((split_dim,), jnp.float32)
        beta = jnp.zeros((split_dim,), jnp.float32)
        params.append((wq, wk, wv, gamma, beta))
    return params


def pack_params(params, split_dim, *, compute_dtype=jnp.bfloat16):
    """One-time host-side packing: pre-transpose, fuse QKV, fold 1/sqrt(D),
    128-lane-align each chunk, and store in the MXU compute dtype."""
    D = split_dim
    Dp = _round_up(D, 128)
    scale = 1.0 / (D ** 0.5)
    wqkv, gammas, betas = [], [], []
    for (wq, wk, wv, g, b) in params:
        w = jnp.zeros((D, 3 * Dp), jnp.float32)
        w = w.at[:, 0 * Dp:0 * Dp + D].set(wq.T * scale)   # scale folded into Wq
        w = w.at[:, 1 * Dp:1 * Dp + D].set(wk.T)
        w = w.at[:, 2 * Dp:2 * Dp + D].set(wv.T)
        wqkv.append(w)
        gammas.append(g.reshape(1, D))
        betas.append(b.reshape(1, D))
    wqkv_t = jnp.stack(wqkv).astype(compute_dtype)          # (L, D, 3*Dp)
    gamma = jnp.stack(gammas)                               # (L, 1, D) f32
    beta = jnp.stack(betas)                                 # (L, 1, D) f32
    return wqkv_t, gamma, beta


def reference_forward(x, params, split_dim):
    """Pure-jnp mirror of the PyTorch module (mask=None) for tolerance checks."""
    for (wq, wk, wv, g, b) in params:
        q = x @ wq.T
        k = x @ wk.T
        v = x @ wv.T
        energy = jnp.einsum("bqd,bkd->bqk", q, k) / (split_dim ** 0.5)
        attn = jax.nn.softmax(energy, axis=-1)
        out = jnp.einsum("bqk,bkd->bqd", attn, v)
        y = x + out
        mean = y.mean(axis=-1, keepdims=True)
        var = ((y - mean) ** 2).mean(axis=-1, keepdims=True)
        x = (y - mean) / jnp.sqrt(var + 1e-5) * g + b
    return x


if __name__ == "__main__":
    key = jax.random.PRNGKey(0)
    batch, seq, split_dim, num_layers = 2, 8, 32, 3

    kx, kp = jax.random.split(key)
    x = jax.random.normal(kx, (batch, seq, split_dim), dtype=jnp.float32)
    params = init_params(kp, split_dim, num_layers)
    ref = reference_forward(x, params, split_dim)

    # --- default bf16 MXU path ----------------------------------------------
    w_bf16, gamma, beta = pack_params(params, split_dim,
                                      compute_dtype=jnp.bfloat16)
    out = jax.block_until_ready(
        multi_layer_self_attention(x, w_bf16, gamma, beta))
    assert out.shape == (batch, seq, split_dim)
    assert bool(jnp.all(jnp.isfinite(out)))
    rel = float(jnp.linalg.norm(out - ref) / jnp.linalg.norm(ref))
    assert rel < 3e-2, rel

    # --- f32 path for tight parity with the PyTorch reference ---------------
    w_f32, gamma32, beta32 = pack_params(params, split_dim,
                                         compute_dtype=jnp.float32)
    out32 = jax.block_until_ready(
        multi_layer_self_attention(x, w_f32, gamma32, beta32,
                                   compute_dtype=jnp.float32))
    assert bool(jnp.allclose(out32, ref, atol=1e-2, rtol=1e-2)), \
        float(jnp.max(jnp.abs(out32 - ref)))

    print("KERNEL_OK")
</pallas_src>

<mosaic_0001>
module attributes {stable_mosaic.version = 11 : i64} {
  func.func @_fused_mlsa_kernel(%arg0: i32, %arg1: i32, %arg2: memref<1x8x32xf32, #tpu.memory_space<vmem>>, %arg3: memref<3x32x384xbf16, #tpu.memory_space<vmem>>, %arg4: memref<3x1x32xf32, #tpu.memory_space<vmem>>, %arg5: memref<3x1x32xf32, #tpu.memory_space<vmem>>, %arg6: memref<1x8x32xf32, #tpu.memory_space<vmem>>) attributes {dimension_semantics = [#tpu.dimension_semantics<parallel>, #tpu.dimension_semantics<arbitrary>], iteration_bounds = array<i64: 2, 3>, scalar_prefetch = 0 : i64, scratch_operands = 0 : i64, tpu.core_type = #tpu.core_type<tc>, window_params = [{transform_indices = @transform_0, window_bounds = array<i64: 1, 8, 32>}, {pipeline_mode = #tpu.pipeline_mode<synchronous>, transform_indices = @transform_1, window_bounds = array<i64: 3, 32, 384>}, {pipeline_mode = #tpu.pipeline_mode<synchronous>, transform_indices = @transform_2, window_bounds = array<i64: 3, 1, 32>}, {pipeline_mode = #tpu.pipeline_mode<synchronous>, transform_indices = @transform_3, window_bounds = array<i64: 3, 1, 32>}, {transform_indices = @transform_4, window_bounds = array<i64: 1, 8, 32>}]} {
    %c0_i32 = arith.constant 0 : i32
    %0 = arith.cmpi eq, %arg1, %c0_i32 : i32
    %1 = arith.extui %0 : i1 to i32
    %c0_i32_0 = arith.constant 0 : i32
    %2 = arith.cmpi ne, %1, %c0_i32_0 : i32
    scf.if %2 {
      %c0_21 = arith.constant 0 : index
      %c0_22 = arith.constant 0 : index
      %c0_23 = arith.constant 0 : index
      %62 = vector.load %arg2[%c0_21, %c0_22, %c0_23] : memref<1x8x32xf32, #tpu.memory_space<vmem>>, vector<1x8x32xf32>
      %c0_24 = arith.constant 0 : index
      %c0_25 = arith.constant 0 : index
      %c0_26 = arith.constant 0 : index
      %63 = vector.load %arg6[%c0_24, %c0_25, %c0_26] : memref<1x8x32xf32, #tpu.memory_space<vmem>>, vector<1x8x32xf32>
      tpu.vector_store %arg6[%c0_24, %c0_25, %c0_26], %62 {strides = array<i32>} : memref<1x8x32xf32, #tpu.memory_space<vmem>>, vector<1x8x32xf32>,
    } else {
    }
    %3 = arith.index_cast %arg1 : i32 to index
    %c0 = arith.constant 0 : index
    %c0_1 = arith.constant 0 : index
    %4 = vector.load %arg3[%3, %c0, %c0_1] : memref<3x32x384xbf16, #tpu.memory_space<vmem>>, vector<1x32x384xbf16>
    %5 = vector.shape_cast %4 : vector<1x32x384xbf16> to vector<32x384xbf16>
    %6 = arith.index_cast %arg1 : i32 to index
    %c0_2 = arith.constant 0 : index
    %c0_3 = arith.constant 0 : index
    %7 = vector.load %arg4[%6, %c0_2, %c0_3] : memref<3x1x32xf32, #tpu.memory_space<vmem>>, vector<1x1x32xf32>
    %8 = vector.shape_cast %7 : vector<1x1x32xf32> to vector<1x32xf32>
    %9 = arith.index_cast %arg1 : i32 to index
    %c0_4 = arith.constant 0 : index
    %c0_5 = arith.constant 0 : index
    %10 = vector.load %arg5[%9, %c0_4, %c0_5] : memref<3x1x32xf32, #tpu.memory_space<vmem>>, vector<1x1x32xf32>
    %11 = vector.shape_cast %10 : vector<1x1x32xf32> to vector<1x32xf32>
    %c0_6 = arith.constant 0 : index
    %c0_7 = arith.constant 0 : index
    %c0_8 = arith.constant 0 : index
    %12 = vector.load %arg6[%c0_6, %c0_7, %c0_8] : memref<1x8x32xf32, #tpu.memory_space<vmem>>, vector<1x8x32xf32>
    %13 = arith.truncf %12 : vector<1x8x32xf32> to vector<1x8x32xbf16>
    %14 = vector.shape_cast %13 : vector<1x8x32xbf16> to vector<8x32xbf16>
    %cst = arith.constant dense<0.000000e+00> : vector<8x384xf32>
    %15 = tpu.matmul %14, %5, %cst {dimension_numbers = #tpu.dot_dimension_numbers<[1], [0], [0], [1], [0, 0, 1, 1], [], []>} : vector<8x32xbf16>, vector<32x384xbf16>, vector<8x384xf32> -> vector<8x384xf32>
    %16 = vector.shape_cast %15 : vector<8x384xf32> to vector<1x8x384xf32>
    %17 = vector.extract_strided_slice %16 {offsets = [0, 0, 0], sizes = [1, 8, 32], strides = [1, 1, 1]} : vector<1x8x384xf32> to vector<1x8x32xf32>
    %18 = vector.extract_strided_slice %16 {offsets = [0, 0, 128], sizes = [1, 8, 32], strides = [1, 1, 1]} : vector<1x8x384xf32> to vector<1x8x32xf32>
    %19 = vector.extract_strided_slice %16 {offsets = [0, 0, 256], sizes = [1, 8, 32], strides = [1, 1, 1]} : vector<1x8x384xf32> to vector<1x8x32xf32>
    %20 = arith.truncf %17 : vector<1x8x32xf32> to vector<1x8x32xbf16>
    %21 = arith.truncf %18 : vector<1x8x32xf32> to vector<1x8x32xbf16>
    "tpu.trace_start"() <{level = 10 : i32, message = "bqd,bkd->bqk"}> : () -> ()
    %cst_9 = arith.constant dense<0.000000e+00> : vector<1x8x8xf32>
    %22 = tpu.matmul %20, %21, %cst_9 {dimension_numbers = #tpu.dot_dimension_numbers<[2], [2], [1], [1], [0, 0, 0, 1, 1, 1], [0], [0]>} : vector<1x8x32xbf16>, vector<1x8x32xbf16>, vector<1x8x8xf32> -> vector<1x8x8xf32>
    "tpu.trace_stop"() : () -> ()
    %cst_10 = arith.constant dense<0xFF800000> : vector<1x8xf32>
    %23 = vector.multi_reduction <maximumf>, %22, %cst_10 [2] : vector<1x8x8xf32> to vector<1x8xf32>
    %24 = vector.shape_cast %23 : vector<1x8xf32> to vector<1x8x1xf32>
    %25 = vector.broadcast %24 : vector<1x8x1xf32> to vector<1x8x8xf32>
    %26 = arith.subf %22, %25 : vector<1x8x8xf32>
    %27 = math.exp %26 : vector<1x8x8xf32>
    %cst_11 = arith.constant dense<0.000000e+00> : vector<1x8xf32>
    %28 = vector.multi_reduction <add>, %27, %cst_11 [2] : vector<1x8x8xf32> to vector<1x8xf32>
    %29 = vector.shape_cast %28 : vector<1x8xf32> to vector<1x8x1xf32>
    %30 = arith.truncf %27 : vector<1x8x8xf32> to vector<1x8x8xbf16>
    %31 = arith.truncf %19 : vector<1x8x32xf32> to vector<1x8x32xbf16>
    "tpu.trace_start"() <{level = 10 : i32, message = "bqk,bkd->bqd"}> : () -> ()
    %cst_12 = arith.constant dense<0.000000e+00> : vector<1x8x32xf32>
    %32 = tpu.matmul %30, %31, %cst_12 {dimension_numbers = #tpu.dot_dimension_numbers<[2], [1], [1], [2], [0, 0, 0, 1, 1, 2], [0], [0]>} : vector<1x8x8xbf16>, vector<1x8x32xbf16>, vector<1x8x32xf32> -> vector<1x8x32xf32>
    "tpu.trace_stop"() : () -> ()
    %33 = tpu.reciprocal %29 {approx = true} : vector<1x8x1xf32> -> vector<1x8x1xf32>
    %34 = vector.broadcast %33 : vector<1x8x1xf32> to vector<1x8x32xf32>
    %35 = arith.mulf %32, %34 : vector<1x8x32xf32>
    %36 = arith.addf %12, %35 : vector<1x8x32xf32>
    %cst_13 = arith.constant dense<0.000000e+00> : vector<1x8xf32>
    %37 = vector.multi_reduction <add>, %36, %cst_13 [2] : vector<1x8x32xf32> to vector<1x8xf32>
    %38 = vector.shape_cast %37 : vector<1x8xf32> to vector<1x8x1xf32>
    %cst_14 = arith.constant 3.200000e+01 : f32
    %39 = vector.broadcast %cst_14 : f32 to vector<1x8x1xf32>
    %40 = arith.divf %38, %39 : vector<1x8x1xf32>
    %41 = vector.broadcast %40 : vector<1x8x1xf32> to vector<1x8x32xf32>
    %42 = arith.subf %36, %41 : vector<1x8x32xf32>
    %43 = arith.mulf %42, %42 : vector<1x8x32xf32>
    %cst_15 = arith.constant dense<0.000000e+00> : vector<1x8xf32>
    %44 = vector.multi_reduction <add>, %43, %cst_15 [2] : vector<1x8x32xf32> to vector<1x8xf32>
    %45 = vector.shape_cast %44 : vector<1x8xf32> to vector<1x8x1xf32>
    %cst_16 = arith.constant 3.200000e+01 : f32
    %46 = vector.broadcast %cst_16 : f32 to vector<1x8x1xf32>
    %47 = arith.divf %45, %46 : vector<1x8x1xf32>
    %48 = vector.broadcast %40 : vector<1x8x1xf32> to vector<1x8x32xf32>
    %49 = arith.subf %36, %48 : vector<1x8x32xf32>
    %cst_17 = arith.constant 9.99999974E-6 : f32
    %50 = vector.broadcast %cst_17 : f32 to vector<1x8x1xf32>
    %51 = arith.addf %47, %50 : vector<1x8x1xf32>
    %52 = math.rsqrt %51 : vector<1x8x1xf32>
    %53 = vector.broadcast %52 : vector<1x8x1xf32> to vector<1x8x32xf32>
    %54 = arith.mulf %49, %53 : vector<1x8x32xf32>
    %55 = vector.shape_cast %8 : vector<1x32xf32> to vector<1x1x32xf32>
    %56 = vector.broadcast %55 : vector<1x1x32xf32> to vector<1x8x32xf32>
    %57 = arith.mulf %54, %56 : vector<1x8x32xf32>
    %58 = vector.shape_cast %11 : vector<1x32xf32> to vector<1x1x32xf32>
    %59 = vector.broadcast %58 : vector<1x1x32xf32> to vector<1x8x32xf32>
    %60 = arith.addf %57, %59 : vector<1x8x32xf32>
    %c0_18 = arith.constant 0 : index
    %c0_19 = arith.constant 0 : index
    %c0_20 = arith.constant 0 : index
    %61 = vector.load %arg6[%c0_18, %c0_19, %c0_20] : memref<1x8x32xf32, #tpu.memory_space<vmem>>, vector<1x8x32xf32>
    tpu.vector_store %arg6[%c0_18, %c0_19, %c0_20], %60 {strides = array<i32>} : memref<1x8x32xf32, #tpu.memory_space<vmem>>, vector<1x8x32xf32>,
    return
  }
  func.func @transform_0(%arg0: i32, %arg1: i32) -> (i32, i32, i32) {
    %c0_i32 = arith.constant 0 : i32
    %c0_i32_0 = arith.constant 0 : i32
    %c0_i32_1 = arith.constant 0 : i32
    return %arg0, %c0_i32, %c0_i32_0 : i32, i32, i32
  }
  func.func @transform_1(%arg0: i32, %arg1: i32) -> (i32, i32, i32) {
    %c0_i32 = arith.constant 0 : i32
    %c0_i32_0 = arith.constant 0 : i32
    %c0_i32_1 = arith.constant 0 : i32
    %c0_i32_2 = arith.constant 0 : i32
    return %c0_i32, %c0_i32_0, %c0_i32_1 : i32, i32, i32
  }
  func.func @transform_2(%arg0: i32, %arg1: i32) -> (i32, i32, i32) {
    %c0_i32 = arith.constant 0 : i32
    %c0_i32_0 = arith.constant 0 : i32
    %c0_i32_1 = arith.constant 0 : i32
    %c0_i32_2 = arith.constant 0 : i32
    return %c0_i32, %c0_i32_0, %c0_i32_1 : i32, i32, i32
  }
  func.func @transform_3(%arg0: i32, %arg1: i32) -> (i32, i32, i32) {
    %c0_i32 = arith.constant 0 : i32
    %c0_i32_0 = arith.constant 0 : i32
    %c0_i32_1 = arith.constant 0 : i32
    %c0_i32_2 = arith.constant 0 : i32
    return %c0_i32, %c0_i32_0, %c0_i32_1 : i32, i32, i32
  }
  func.func @transform_4(%arg0: i32, %arg1: i32) -> (i32, i32, i32) {
    %c0_i32 = arith.constant 0 : i32
    %c0_i32_0 = arith.constant 0 : i32
    %c0_i32_1 = arith.constant 0 : i32
    return %arg0, %c0_i32, %c0_i32_0 : i32, i32, i32
  }
}

</mosaic_0001>

<bundles_post_ra>
// kernel: tpu_custom_call.1
= control target key start
LH: loop header
LB: loop body
LE: loop exit
PB: predicated region body
PF: predicated region fallthrough
CT: control target
= control target key end

     0   :  { %s1249_s0 = inlined_call_operand.hbm [shape: f32[2,8,32], index: 0, kind: input, shape index: {}]   ;;  %s1250_s1 = inlined_call_operand.hbm [shape: bf16[3,32,384], index: 1, kind: input, shape index: {}]   ;;  %s1251_s2 = inlined_call_operand.vmem [shape: f32[3,1,32], index: 2, kind: input, shape index: {}]   ;;  %s1252_s3 = inlined_call_operand.vmem [shape: f32[3,1,32], index: 3, kind: input, shape index: {}]   ;;  %s1253_s4 = inlined_call_operand.hbm [shape: f32[2,8,32], index: 4, kind: output, shape index: {}]  }
   0x1   :  { %1258 = sst [smem:[#allocation11_spill]] %s1250_s1 }
   0x2   :  { %9 = vsyncpa [#allocation3], 0 }
   0x3   :  { %11 = vsyncpa [#allocation3 + $0x1], 0 }
   0x4   :  { %12 = vsyncpa [#allocation6], 0 }
   0x5   :  { %13 = vsyncpa [#allocation4], 0 }
   0x6   :  { %15 = vsyncpa [#allocation4 + $0x1], 0  ;;  %s990_s15 = smov 0   ;;  %s992_s16 = smov 0  }
   0x7   :  { %s994_s17 = smov 0   ;;  %s996_s18 = smov 0  }
   0x8   :  { %s998_s19 = smov 0   ;;  %s1000_s20 = smov 0  }
   0x9   :  { %s1002_s21 = smov 0   ;;  %s1004_s22 = smov 0  }
   0xa LB: > { %s630_s23 = sadd.s32 4294967295, %s955_s22   ;;  %s631_s24 = sadd.s32 4294967294, %s955_s22   ;;  %s955_s22 = sphi %s1004_s22, %s21_s22   ;;  %s951_s21 = sphi %s1002_s21, %s1279_s21   ;;  %s947_s20 = sphi %s1000_s20, %s1278_s20   ;;  %s943_s19 = sphi %s998_s19, %s1277_s19   ;;  %s939_s18 = sphi %s996_s18, %s1276_s18   ;;  %s935_s17 = sphi %s994_s17, %s1275_s17   ;;  %s931_s16 = sphi %s992_s16, %s1274_s16   ;;  %s927_s15 = sphi %s990_s15, %s1273_s15  }
   0xb   : > { %p53_p0 = scmp.ne.s32.totalorder %s931_s16, %s927_s15  ;;  %p1034_p1 = scmp.eq.s32.totalorder %s630_s23, 0 }
   0xc   : > { %p1038_p2 = scmp.eq.s32.totalorder %s630_s23, 5  ;;  %p146_p3 = scmp.eq.s32.totalorder %s631_s24, 5 }
   0xd   : > { %s1259_s25 = scalar_select %p1034_p1, 1, 0 }
   0xe   : > { %s1260_s26 = scalar_select %p1038_p2, 1, 0 }
   0xf   : > { %p1044_p4 = por %p1034_p1, %p53_p0  ;;  %p632_p5 = scmp.ge.s32.totalorder %s955_s22, 1 }
  0x10   : > { %p1049_p6 = por %p146_p3, %p53_p0  ;;  %p153_p7 = scmp.lt.s32.totalorder %s955_s22, 7 }
  0x11   : > { %s1261_s27 = scalar_select %p1044_p4, 1, 0 }
  0x12   : > { %s1262_s28 = scalar_select %p1049_p6, 1, 0 }
  0x13   : > { %p1054_p8 = pnand %p632_p5, %p153_p7  ;;  %s957_s30 = smov [#allocation5]  }
  0x14   : > { %s165_s5 = sshll.u32 %s957_s30, 4  ;;  %s1265_s1 = sld [smem:[#allocation11_spill]]  ;;  %s166_s5 = int_to_ptr.vmem [resolvable:$true] %s165_s5 }
  0x15   : > { %s1263_s29 = scalar_select %p1054_p8, 1, 0 }
  0x16   : > { %p695_p9 = pneg %p1054_p8 }
  0x18   : > { %p1062_p10 = pnand %p695_p9, %p1034_p1 }
  0x1a   : > { %s795_s9 = scalar_lea.hbm %s1265_s1, 2304  ;;  %p797_p12 = pneg %p1062_p10 }
  0x1b   : > { %p796_p11 = scmp.ne.s32.totalorder %s1265_s1, %s795_s9  ;;  %p802_p3 = scmp.lt.u32.totalorder %s795_s9, %s1265_s1 }
  0x1d   : > { %p798_p13 = pnand %p797_p12, %p796_p11 }
  0x1f   : > { %p799_p0 = pneg %p798_p13 }
  0x21   : > { %p804_p5 = pnand %p802_p3, %p799_p0 }
  0x23   : > { %807 = shalt.err (!%p804_p5)
}
  0x24   : > { %s808_s14 = scalar_lea.vmem %s166_s5, 2304  ;;  %p816_p1 = scmp.lt.s32.totalorder %s166_s5, %s166_s5 }
  0x25   : > { %p809_p7 = scmp.ne.s32.totalorder %s166_s5, %s808_s14  ;;  %p817_p4 = scmp.lt.s32.totalorder %s808_s14, %s808_s14 }
  0x27   : > { %p811_p9 = pnand %p809_p7, %p797_p12  ;;  %p818_p8 = por %p817_p4, %p816_p1 }
  0x29   : > { %p812_p6 = pneg %p811_p9 }
  0x2b   : > { %p819_p2 = pnand %p818_p8, %p812_p6 }
  0x2d   : > { %822 = shalt.err (!%p819_p2)
}
  0x2e   : > { %s958_s23 = smov 192   ;;  %s959_s24 = smov 12  }
  0x2f   : > { %698 = dma.hbm_to_vmem [thread:$0]  (!%p1062_p10), %s1265_s1, 2304, %s166_s5, [#allocation6], %s958_s23, %s958_s23, %s959_s24  }
  0x30   : > { %s30_s8 = sadd.s32 1, %s947_s20  ;;  %s33_s9 = sadd.s32 1, %s951_s21 }
  0x31   : > { %p31_p1 = scmp.ge.s32.totalorder %s30_s8, 3  ;;  %s40_s10 = sadd.s32 1, %s935_s17 }
  0x32   : > { %p47_p2 = scmp.ne.s32.totalorder %s935_s17, %s931_s16  ;;  %p48_p4 = scmp.eq.s32.totalorder %s955_s22, 0 }
  0x33   : > { %s1281_s8 = smov (%p31_p1, %s30_s8), 0  ;;  %s1283_s9 = smov (!%p31_p1, %s33_s9), %s951_s21 }
  0x34   : > { %p1266_p6 = scmp.ne.s32.totalorder %s1260_s26, 0  ;;  %p35_p11 = scmp.ge.s32.totalorder %s1283_s9, 2 }
  0x35   : > { %p708_p10 = scmp.lt.s32.totalorder %s955_s22, 6  ;;  %p49_p12 = por %p48_p4, %p47_p2 }
  0x36   : > { %p1093_p8 = por %p1266_p6, %p47_p2  ;;  %s185_s5 = sand.u32 1, %s935_s17  }
  0x37   : > { %s1285_s9 = smov (%p35_p11, %s1283_s9), 0  ;;  %s635_s11 = sshll.u32 %s185_s5, 3 }
  0x38   : > { %s37_s12 = ssub.s32 %s951_s21, %s1285_s9  ;;  %s636_s13 = sshll.u32 %s951_s21, 7 }
  0x39   : > { %p38_p13 = scmp.eq.s32.totalorder %s37_s12, 0  ;;  %s1107_s26 = scalar_lea.hbm %s1249_s0, %s636_s13 }
  0x3a   : > { %s189_s24 = scalar_lea.vmem [#allocation2], %s635_s11  ;;  %p1116_p0 = pnand %p708_p10, %p49_p12 }
  0x3b   : > { %s196_s30 = sshll.u32 %s189_s24, 4  ;;  %s186_s12 = scalar_lea.sflag [#allocation3], %s185_s5  ;;  %s1112_s30 = int_to_ptr.vmem [resolvable:$true] %s196_s30 }
  0x3c   : > { %s1110_s7 = scalar_select %p38_p13, %s935_s17, %s40_s10  }
  0x3d   : > { %s823_s13 = scalar_lea.hbm %s1107_s26, 128  ;;  %p825_p5 = pneg %p1116_p0 }
  0x3e   : > { %p824_p3 = scmp.ne.s32.totalorder %s1107_s26, %s823_s13  ;;  %s828_s14 = scalar_lea.hbm %s1249_s0, 256 }
  0x3f   : > { %p829_p1 = scmp.lt.u32.totalorder %s1107_s26, %s1249_s0  ;;  %p830_p2 = scmp.lt.u32.totalorder %s828_s14, %s823_s13 }
  0x40   : > { %p826_p7 = pnand %p825_p5, %p824_p3  ;;  %p832_p6 = scmp.lt.u32.totalorder %s823_s13, %s1107_s26 }
  0x41   : > { %p831_p4 = por %p830_p2, %p829_p1 }
  0x42   : > { %p827_p9 = pneg %p826_p7 }
  0x43   : > { %p833_p11 = por %p832_p6, %p831_p4 }
  0x45   : > { %p834_p10 = pnand %p833_p11, %p827_p9 }
  0x47   : > { %837 = shalt.err (!%p834_p10)
}
  0x48   : > { %s838_s5 = scalar_lea.vmem %s1112_s30, 128  ;;  %s960_s10 = smov [#allocation2]  }
  0x49   : > { %p839_p12 = scmp.ne.s32.totalorder %s1112_s30, %s838_s5  ;;  %s843_s11 = sshll.u32 %s960_s10, 4  ;;  %s844_s11 = int_to_ptr.vmem [resolvable:$false] %s843_s11 }
  0x4a   : > { %s845_s23 = scalar_lea.vmem %s844_s11, 256  ;;  %p846_p7 = scmp.lt.s32.totalorder %s1112_s30, %s844_s11 }
  0x4b   : > { %p841_p13 = pnand %p839_p12, %p825_p5  ;;  %p847_p1 = scmp.lt.s32.totalorder %s845_s23, %s838_s5 }
  0x4d   : > { %p842_p3 = pneg %p841_p13  ;;  %p848_p2 = por %p847_p1, %p846_p7 }
  0x4f   : > { %p849_p4 = pnand %p848_p2, %p842_p3 }
  0x51   : > { %852 = shalt.err (!%p849_p4)
}
  0x52   : > { %702 = dma.hbm_to_vmem [thread:$0]  (!%p1116_p0), %s1107_s26, 128, %s1112_s30, %s186_s12  }
  0x53   : > { %p1269_p9 = scmp.ne.s32.totalorder %s1263_s29, 0 }
  0x54   : > { %s1148_s13 = sand.u32 (!%p1269_p9), 1, %s931_s16   ;;  %p1270_p5 = scmp.ne.s32.totalorder (!%p1269_p9), %s1261_s27, 0 }
  0x55   : > { %205 = sbr.rel (%p1269_p9) target bundleno = 1255 (0x4e7), region = 36  ;;  %s638_s14 = sshll.u32 (!%p1269_p9), %s1148_s13, 3 }
  0x56   : > { %s208_s24 = scalar_lea.sflag (!%p1269_p9), [#allocation3], %s1148_s13  ;;  %s211_s5 = scalar_lea.vmem (!%p1269_p9), [#allocation2], %s638_s14 }
  0x5c   : > { %914 = dma.done.wait (%p1270_p5), %s208_s24, 128  }
  0x5d   : > { %916 = vsyncadd (%p1270_p5), %s208_s24, 4294967168  ;;  %p1271_p6 = scmp.ne.s32.totalorder %s1259_s25, 0 }
  0x5f   : > { %918 = dma.done.wait (%p1271_p6), [#allocation6], 2304  }
  0x60   : > { %920 = vsyncadd (%p1271_p6), [#allocation6], 4294964992  ;;  %s1160_s1 = scalar_lea.vmem [#allocation7], %s638_s14  ;;  %p641_p0 = scmp.ne.s32.totalorder %s939_s18, 0 }
  0x61   : > { %v245_v0 = vld [vmem:[%s211_s5] sm:$0xff] (!%p641_p0)  ;;  %vm246_vm0 = vcmask (!%p641_p0), 261120  }
  0x62   : > { %244 = sbr.rel (%p641_p0) target bundleno = 105 (0x69), region = 48  ;;  %247 = vst.msk [vmem:[%s1160_s1] sm:$0xff] (!%p641_p0), %vm246_vm0, %v245_v0 }
  0x69 PF: > { %s659_s27 = smul.u32 48, %s939_s18  ;;  %v961_v1 = vmov 0   ;;  %v1166_v4 = vld [vmem:[%s1160_s1] sm:$0xff]  ;;  %vm297_vm1 = vcmask 261120   ;;  %v962_v8 = vmov 0.0   ;;  %vm963_vm2 = vmmov 0   ;;  %s259_s30 = scalar_lea.vmem %s1251_s2, %s939_s18 }
  0x6a   : > { %333 = vmatprep.mubr.bf16.mxu0 %v961_v1  ;;  %v264_v7 = vpack.c.bf16 %v1166_v4, %v1166_v4  ;;  %667 = vmatprep.subr.bf16.mxu1 %v962_v8  ;;  %vm430_vm3 = vcmask 64512   ;;  %vm445_vm4 = vcmask 1043456   ;;  %s261_s11 = scalar_lea.vmem %s1252_s3, %s939_s18  ;;  %v653_v53 = vld [vmem:[%s259_s30] ss:$0 sm:$0xff]  ;;  %s656_s23 = sshll.u32 %s943_s19, 7 }
  0x6b   : > { %s250_s29 = scalar_lea.vmem [#allocation5], %s659_s27  ;;  %671 = vmatprep.mubr.msk.bf16.mxu1 %vm963_vm2, %v962_v8  ;;  %v654_v55 = vld [vmem:[%s261_s11] ss:$0 sm:$0xff]  ;;  %s535_s14 = sshll.u32 %s1160_s1, 4  ;;  %s1195_s14 = int_to_ptr.vmem [resolvable:$true] %s535_s14 }
  0x6c   : > { %v781_v2 = vld [vmem:[%s250_s29 + $0x4] ss:$12 sps:$4 sm:$0xff]   ;;  %v783_v3 = vld [vmem:[%s250_s29] ss:$12 sps:$4 sm:$0xff]   ;;  %v784_v5 = vld [vmem:[%s250_s29 + $0x1c] ss:$12 sps:$4 sm:$0xff]   ;;  %s1193_s27 = scalar_lea.hbm %s1253_s4, %s656_s23 }
  0x6d   : > { %301 = vmatprep.subr.bf16.mxu0 %v781_v2  ;;  %v786_v6 = vld [vmem:[%s250_s29 + $0x18] ss:$12 sps:$4 sm:$0xff]   ;;  %v787_v9 = vld [vmem:[%s250_s29 + $0x8] ss:$12 sps:$4 sm:$0xff]   ;;  %v788_v10 = vld [vmem:[%s250_s29 + $0x20] ss:$12 sps:$4 sm:$0xff]  }
  0x6e   : > { %302 = vmatpush1.bf16.msra.mxu0 %v783_v3  ;;  %668 = vmatpush3.bf16.msra.mxu1 %v787_v9  ;;  %s522_s18 = scalar_lea.sflag [#allocation4], %s1148_s13  ;;  %s853_s29 = scalar_lea.vmem %s1195_s14, 128 }
  0x6f   : > { %303 = vmatprep.subr.bf16.mxu0 %v784_v5  ;;  %669 = vmatprep.subr.bf16.mxu1 %v962_v8  ;;  %p854_p11 = scmp.ne.s32.totalorder %s1195_s14, %s853_s29  ;;  %s964_s19 = smov [#allocation7]  }
  0x70   : > { %s857_s25 = sshll.u32 %s964_s19, 4  ;;  %s858_s25 = int_to_ptr.vmem [resolvable:$false] %s857_s25 }
  0x71   : > { %p855_p10 = pnand %p854_p11, %p1093_p8  ;;  %s859_s26 = scalar_lea.vmem %s858_s25, 256 }
  0x72   : > { %304 = vmatpush1.bf16.msra.mxu0 %v786_v6  ;;  %670 = vmatpush3.bf16.msra.mxu1 %v788_v10  ;;  %p860_p13 = scmp.lt.s32.totalorder %s1195_s14, %s858_s25  ;;  %p861_p3 = scmp.lt.s32.totalorder %s859_s26, %s853_s29 }
  0x73   : > { %675 = vmatprep.subr.bf16.mxu0 %v962_v8  ;;  %681 = vmatprep.subr.bf16.mxu1 %v962_v8  ;;  %p856_p12 = pneg %p855_p10 }
  0x74   : > { %p862_p7 = por %p861_p3, %p860_p13 }
  0x75   : > { %649 = vmatmul.mubr.msk.bf16.vlgmr.msra.gmra.mrb[0].mxu0 %vm297_vm1, %v264_v7  ;;  %672 = vmatmul.mubr.msk.bf16.vlgmr.msra.gmra.mrb[0].mxu1 %vm297_vm1, %v264_v7 }
  0x76   : > { %677 = vmatprep.mubr.msk.bf16.mxu0 %vm963_vm2, %v962_v8  ;;  %683 = vmatprep.mubr.msk.bf16.mxu1 %vm963_vm2, %v962_v8  ;;  %p863_p1 = pnand %p862_p7, %p856_p12 }
 0x148   : > { %v335_v11 = vpop.f32.mrb[0].mxu0  ;;  %v376_v23 = vpop.f32.mrb[0].mxu1 }
 0x149   : > { %v337_v12 = vpop.f32.mrb[1].mxu0  ;;  %v382_v17 = vpack.c.bf16 %v335_v11, %v335_v11  ;;  %v441_v24 = vpack.c.bf16 %v376_v23, %v376_v23  ;;  %v673_v25 = vpop.f32.mrb[1].mxu1 }
 0x14a   : > { %v383_v13 = vpack.c.bf16 %v337_v12, %v337_v12  ;;  %v339_v14 = vpop.f32.mrb[2].mxu0  ;;  %v379_v26 = vpop.f32.mrb[2].mxu1 }
 0x14b   : > { %v340_v15 = vpop.f32.mrb[3].mxu0  ;;  %v447_v27 = vsel %vm445_vm4, %v441_v24, 0  ;;  %v674_v28 = vpop.f32.mrb[3].mxu1 }
 0x14c   : > { %v388_v16 = vsel %vm297_vm1, %v383_v13, 0  ;;  %682 = vmatpush3.bf16.msra.mxu1 %v447_v27 }
 0x14d   : > { %676 = vmatpush3.bf16.xpose.msra.mxu0 %v388_v16 }
 0x154   : > { %678 = vmatmul.mubr.msk.bf16.vlgmr.msra.gmra.mrb[4].mxu0 %vm297_vm1, %v382_v17 }
 0x227   : > { %v424_v18 = vpop.f32.mrb[4].mxu0 }
 0x228   : > { %v679_v19 = vpop.f32.mrb[5].mxu0  ;;  %v431_v20 = vsel %vm430_vm3, %v424_v18, -inf }
 0x229   : > { %432 = vmax.xlane.f32.xlu0 %v431_v20  ;;  %v427_v21 = vpop.f32.mrb[6].mxu0 }
 0x22a   : > { %v680_v22 = vpop.f32.mrb[7].mxu0 }
 0x2b6   : > { %v433_v29 = vpop.xlane.xlu0 %432 }
 0x2b7   : > { %v434_v30 = vsub.f32 %v424_v18, %v433_v29 }
 0x2b9   : > { %v435_v31 = vmul.f32 1.442695, %v434_v30 }
 0x2bb   : > { %789 = vpow2.f32 %v435_v31 }
 0x2c5   : > { %v790_v32 = vpop.eup %789 }
 0x2c6   : > { %v437_v33 = vsel %vm430_vm3, %v790_v32, 0.0  ;;  %v440_v34 = vpack.c.bf16 %v790_v32, %v790_v32 }
 0x2c7   : > { %438 = vadd.xlane.f32.xlu0 %v437_v33 }
 0x2c8   : > { %684 = vmatmul.mubr.msk.bf16.vlgmr.msra.gmra.mrb[4].mxu1 %vm430_vm3, %v440_v34 }
 0x354   : > { %v439_v35 = vpop.xlane.xlu0 %438 }
 0x355   : > { %791 = vrcp.f32 %v439_v35 }
 0x35f   : > { %v792_v36 = vpop.eup %791 }
 0x39b   : > { %v483_v37 = vpop.f32.mrb[4].mxu1 }
 0x39c   : > { %v490_v38 = vmul.f32 %v792_v36, %v483_v37  ;;  %v685_v39 = vpop.f32.mrb[5].mxu1 }
 0x39d   : > { %v486_v40 = vpop.f32.mrb[6].mxu1 }
 0x39e   : > { %v686_v41 = vpop.f32.mrb[7].mxu1  ;;  %v491_v42 = vadd.f32 %v490_v38, %v1166_v4 }
 0x3a0   : > { %v492_v43 = vsel %vm297_vm1, %v491_v42, 0.0 }
 0x3a1   : > { %493 = vadd.xlane.f32.xlu1 %v492_v43 }
 0x42e   : > { %v494_v44 = vpop.xlane.xlu1 %493 }
 0x42f   : > { %v496_v45 = vmul.f32 0.03125, %v494_v44 }
 0x431   : > { %v497_v46 = vsub.f32 %v491_v42, %v496_v45 }
 0x433   : > { %v498_v47 = vmul.f32 %v497_v46, %v497_v46 }
 0x435   : > { %v499_v48 = vsel %vm297_vm1, %v498_v47, 0.0 }
 0x436   : > { %500 = vadd.xlane.f32.xlu1 %v499_v48 }
 0x4c3   : > { %v501_v49 = vpop.xlane.xlu1 %500 }
 0x4c4   : > { %v502_v50 = vmul.f32 0.03125, %v501_v49 }
 0x4c6   : > { %v503_v51 = vadd.f32 1e-05, %v502_v50 }
 0x4c8   : > { %793 = vrsqrt.f32 %v503_v51 }
 0x4d2   : > { %v794_v52 = vpop.eup %793 }
 0x4d3   : > { %v505_v54 = vmul.f32 %v794_v52, %v497_v46 }
 0x4d5   : > { %v512_v56 = vmul.f32 %v653_v53, %v505_v54 }
 0x4d7   : > { %v519_v57 = vadd.f32 %v654_v55, %v512_v56 }
 0x4d9   : > { %520 = vst.msk [vmem:[%s1160_s1] sm:$0xff] %vm297_vm1, %v519_v57 }
 0x4da   : > { %866 = shalt.err (!%p863_p1)
}
 0x4db   : > { %s867_s13 = scalar_lea.hbm %s1193_s27, 128  ;;  %s871_s12 = scalar_lea.hbm %s1253_s4, 256 }
 0x4dc   : > { %p868_p2 = scmp.ne.s32.totalorder %s1193_s27, %s867_s13  ;;  %p872_p5 = scmp.lt.u32.totalorder %s1193_s27, %s1253_s4 }
 0x4dd   : > { %p873_p6 = scmp.lt.u32.totalorder %s871_s12, %s867_s13  ;;  %p875_p11 = scmp.lt.u32.totalorder %s867_s13, %s1193_s27 }
 0x4de   : > { %p869_p4 = pnand %p868_p2, %p1093_p8 }
 0x4df   : > { %p874_p0 = por %p873_p6, %p872_p5 }
 0x4e0   : > { %p870_p9 = pneg %p869_p4 }
 0x4e1   : > { %p876_p10 = por %p875_p11, %p874_p0 }
 0x4e3   : > { %p877_p12 = pnand %p876_p10, %p870_p9 }
 0x4e5   : > { %880 = shalt.err (!%p877_p12)
}
 0x4e6   : > { %693 = dma.vmem_to_hbm [thread:$0]  (%p1093_p8), %s1195_s14, 128, %s1193_s27, %s522_s18  }
 0x4e7 PF: > { %p710_p13 = scmp.ge.s32.totalorder %s955_s22, 2  ;;  %s547_s23 = sand.u32 1, %s927_s15  }
 0x4e8   : > { %p1272_p3 = scmp.ne.s32.totalorder %s1262_s28, 0  ;;  %s548_s24 = scalar_lea.sflag [#allocation4], %s547_s23 }
 0x4ea   : > { %p704_p7 = pnand %p710_p13, %p1272_p3 }
 0x4ec   : > { %922 = dma.done.wait (!%p704_p7), %s548_s24, 128  }
 0x4ed   : > { %924 = vsyncadd (!%p704_p7), %s548_s24, 4294967168  ;;  %s21_s22 = sadd.s32 1, %s955_s22   ;;  %s1273_s15 = smov %s931_s16 }
 0x4ee   : > { %p18_p1 = scmp.ge.s32.totalorder %s21_s22, 8   ;;  %s1274_s16 = smov %s935_s17 }
 0x4ef   : > { %s1275_s17 = smov %s1110_s7  ;;  %s1276_s18 = smov %s947_s20 }
 0x4f0   : > { %s1277_s19 = smov %s951_s21  ;;  %s1278_s20 = smov %s1281_s8 }
 0x4f1   : > { %s1279_s21 = smov %s1285_s9  ;;  %20 = sbr.rel (!%p18_p1) target bundleno = 10 (0xa), region = 92 }
 0x4f8   :  { %553 = vsyncpa [#allocation3], 1 }
 0x4f9   :  { %555 = vsyncpa [#allocation3 + $0x1], 1 }
 0x4fa   :  { %556 = vsyncpa [#allocation6], 1 }
 0x4fb   :  { %557 = vsyncpa [#allocation4], 1 }
 0x4fc   :  { %559 = vsyncpa [#allocation4 + $0x1], 1 }

</bundles_post_ra>
